<compile_context>
chip_gen: v5e
topology: v5e:2x2
jax: 0.10.0
libtpu: 0.0.40
codegen_flags: <defaults>
</compile_context>

<pallas_src>
import functools

import jax
import jax.numpy as jnp
import numpy as np
from jax.experimental import pallas as pl
from jax.experimental.pallas import tpu as pltpu

EPS = 1e-8  # matches speechbrain GlobalLayerNorm EPS


def temporal_block_kernel(x_ref, w1_ref, g1_ref, b1_ref, wd_ref, g2_ref,
                          b2_ref, w2_ref, refl_ref, a1_ref, a2_ref, o_ref,
                          *, K, H, ks, dilation, pad, matmul_dtype):
    x = x_ref[0]                       # (K, B) float32
    a1 = a1_ref[0]                     # PReLU alpha (scalar, SMEM)
    a2 = a2_ref[0]
    inv_n = 1.0 / float(K * H)         # 1 / (time*channels) for gLN

    # --- 1x1 conv: (K,B) @ (B,H) -> (K,H) on the MXU ---
    y = jnp.dot(x.astype(matmul_dtype), w1_ref[...].astype(matmul_dtype),
                preferred_element_type=jnp.float32)
    # PReLU
    y = jnp.where(y > 0, y, a1 * y)

    # --- gLN #1: one-pass stats, rsqrt on EUP, fused scale/shift ---
    s = jnp.sum(y, keepdims=True)                      # (1,1)
    ss = jnp.sum(y * y, keepdims=True)                 # (1,1)
    mean = s * inv_n
    var = ss * inv_n - mean * mean
    inv = jax.lax.rsqrt(var + EPS)                     # EUP slot
    scale = g1_ref[...] * inv                          # (1,H)
    shift = b1_ref[...] - mean * scale                 # (1,H)
    y = y * scale + shift                              # 2 VPU ops/elem

    # --- reflect 'same' padding: halos via one tiny anti-identity matmul ---
    # left[i]  = y[pad - i]   for i in [0, pad)
    # right[i] = y[K - 2 - i] for i in [0, pad)
    if pad > 0:
        R = refl_ref[...]                              # (pad, pad) anti-identity
        left = jnp.dot(R, y[1:pad + 1, :], preferred_element_type=jnp.float32)
        right = jnp.dot(R, y[K - 1 - pad:K - 1, :],
                        preferred_element_type=jnp.float32)
        yp = jnp.concatenate([left, y, right], axis=0)  # (K + 2*pad, H)
    else:
        yp = y

    # --- depthwise conv (grouped, dilation d), taps statically unrolled ---
    wd = wd_ref[...]                                   # load taps once (ks, H)
    z = wd[0:1, :] * yp[0:K, :]                        # seed with tap 0
    for t in range(1, ks):
        off = t * dilation
        z = z + wd[t:t + 1, :] * yp[off:off + K, :]
    # PReLU
    z = jnp.where(z > 0, z, a2 * z)

    # --- gLN #2 (same fused form) ---
    s2 = jnp.sum(z, keepdims=True)
    ss2 = jnp.sum(z * z, keepdims=True)
    mean2 = s2 * inv_n
    var2 = ss2 * inv_n - mean2 * mean2
    inv2 = jax.lax.rsqrt(var2 + EPS)
    scale2 = g2_ref[...] * inv2
    shift2 = b2_ref[...] - mean2 * scale2
    z = z * scale2 + shift2

    # --- 1x1 conv: (K,H) @ (H,B) -> (K,B), plus residual ---
    out = jnp.dot(z.astype(matmul_dtype), w2_ref[...].astype(matmul_dtype),
                  preferred_element_type=jnp.float32)
    o_ref[0] = out + x


def temporal_block(x, w1, g1, b1, wd, g2, b2, w2, a1, a2,
                   *, kernel_size, dilation, matmul_dtype=jnp.float32):
    M, K, B = x.shape
    H = w1.shape[1]
    # SpeechBrain 'same' padding for stride=1: pad = dilation*(ks-1)//2 per side.
    pad = (dilation * (kernel_size - 1)) // 2
    if not (0 <= pad < K):
        raise ValueError(f"reflect pad {pad} must be < time length {K}")

    # Constant anti-identity used to build the reflected halos inside the
    # kernel with a single tiny matmul (host-built, no in-kernel row loops).
    if pad > 0:
        refl = jnp.asarray(np.eye(pad, dtype=np.float32)[::-1])
    else:
        refl = jnp.zeros((1, 1), jnp.float32)          # dummy, unused
    rdim = refl.shape[0]

    kern = functools.partial(temporal_block_kernel, K=K, H=H, ks=kernel_size,
                             dilation=dilation, pad=pad,
                             matmul_dtype=matmul_dtype)

    grid_spec = pltpu.PrefetchScalarGridSpec(
        num_scalar_prefetch=0,
        grid=(M,),
        in_specs=[
            pl.BlockSpec((1, K, B), lambda m: (m, 0, 0)),              # x
            pl.BlockSpec((B, H), lambda m: (0, 0)),                    # w1
            pl.BlockSpec((1, H), lambda m: (0, 0)),                    # gamma1
            pl.BlockSpec((1, H), lambda m: (0, 0)),                    # beta1
            pl.BlockSpec((kernel_size, H), lambda m: (0, 0)),          # depthwise w
            pl.BlockSpec((1, H), lambda m: (0, 0)),                    # gamma2
            pl.BlockSpec((1, H), lambda m: (0, 0)),                    # beta2
            pl.BlockSpec((H, B), lambda m: (0, 0)),                    # w2
            pl.BlockSpec((rdim, rdim), lambda m: (0, 0)),              # reflect perm
            pl.BlockSpec(memory_space=pltpu.MemorySpace.SMEM),         # prelu a1
            pl.BlockSpec(memory_space=pltpu.MemorySpace.SMEM),         # prelu a2
        ],
        out_specs=pl.BlockSpec((1, K, B), lambda m: (m, 0, 0)),
    )

    return pl.pallas_call(
        kern,
        out_shape=jax.ShapeDtypeStruct((M, K, B), jnp.float32),
        grid_spec=grid_spec,
        compiler_params=pltpu.CompilerParams(
            dimension_semantics=("parallel",)),
    )(x, w1, g1, b1, wd, g2, b2, w2, refl, a1, a2)


def temporal_block_ref(x, w1, g1, b1, wd, g2, b2, w2, a1, a2,
                       *, kernel_size, dilation):
    """Pure-JAX reference (same semantics as the PyTorch module, two-pass gLN)."""
    M, K, B = x.shape
    pad = (dilation * (kernel_size - 1)) // 2
    y = x @ w1
    y = jnp.where(y > 0, y, a1[0] * y)
    mean = y.mean(axis=(1, 2), keepdims=True)
    var = ((y - mean) ** 2).mean(axis=(1, 2), keepdims=True)
    y = g1[None] * (y - mean) / jnp.sqrt(var + EPS) + b1[None]
    yp = jnp.pad(y, ((0, 0), (pad, pad), (0, 0)), mode="reflect")
    z = jnp.zeros_like(y)
    for t in range(kernel_size):
        z = z + wd[t][None, None, :] * yp[:, t * dilation:t * dilation + K, :]
    z = jnp.where(z > 0, z, a2[0] * z)
    mean2 = z.mean(axis=(1, 2), keepdims=True)
    var2 = ((z - mean2) ** 2).mean(axis=(1, 2), keepdims=True)
    z = g2[None] * (z - mean2) / jnp.sqrt(var2 + EPS) + b2[None]
    return z @ w2 + x


if __name__ == "__main__":
    # Small but lane-dense shapes: batch M=2, time K=32, channels B=128,
    # hidden H=256, kernel_size=3, dilation=2, stride=1, padding='same', gLN.
    M, K, B, H = 2, 32, 128, 256
    KS, DIL = 3, 2

    key = jax.random.PRNGKey(0)
    k0, k1, k2, k3 = jax.random.split(key, 4)

    x = jax.random.normal(k0, (M, K, B), jnp.float32)
    w1 = jax.random.normal(k1, (B, H), jnp.float32) * 0.1      # 1x1 conv B->H
    wd = jax.random.normal(k2, (KS, H), jnp.float32) * 0.1     # depthwise (tap, ch)
    w2 = jax.random.normal(k3, (H, B), jnp.float32) * 0.1      # 1x1 conv H->B
    g1 = jnp.ones((1, H), jnp.float32)                         # gLN init: gamma=1
    b1 = jnp.zeros((1, H), jnp.float32)                        # gLN init: beta=0
    g2 = jnp.ones((1, H), jnp.float32)
    b2 = jnp.zeros((1, H), jnp.float32)
    a1 = jnp.full((1,), 0.25, jnp.float32)                     # torch PReLU default
    a2 = jnp.full((1,), 0.25, jnp.float32)

    out = temporal_block(x, w1, g1, b1, wd, g2, b2, w2, a1, a2,
                         kernel_size=KS, dilation=DIL)
    out = jax.block_until_ready(out)

    ref = temporal_block_ref(x, w1, g1, b1, wd, g2, b2, w2, a1, a2,
                             kernel_size=KS, dilation=DIL)
    assert out.shape == (M, K, B)
    # One-pass variance vs. two-pass reference: allow a small extra margin.
    np.testing.assert_allclose(np.asarray(out), np.asarray(ref),
                               rtol=2e-4, atol=2e-5)
    print("KERNEL_OK")
</pallas_src>

<mosaic_0001>
module attributes {stable_mosaic.version = 11 : i64} {
  func.func @temporal_block_kernel(%arg0: i32, %arg1: memref<1x32x128xf32, #tpu.memory_space<vmem>>, %arg2: memref<128x256xf32, #tpu.memory_space<vmem>>, %arg3: memref<1x256xf32, #tpu.memory_space<vmem>>, %arg4: memref<1x256xf32, #tpu.memory_space<vmem>>, %arg5: memref<3x256xf32, #tpu.memory_space<vmem>>, %arg6: memref<1x256xf32, #tpu.memory_space<vmem>>, %arg7: memref<1x256xf32, #tpu.memory_space<vmem>>, %arg8: memref<256x128xf32, #tpu.memory_space<vmem>>, %arg9: memref<2x2xf32, #tpu.memory_space<vmem>>, %arg10: memref<1xf32, #tpu.memory_space<smem>>, %arg11: memref<1xf32, #tpu.memory_space<smem>>, %arg12: memref<1x32x128xf32, #tpu.memory_space<vmem>>) attributes {dimension_semantics = [#tpu.dimension_semantics<parallel>], iteration_bounds = array<i64: 2>, scalar_prefetch = 0 : i64, scratch_operands = 0 : i64, tpu.core_type = #tpu.core_type<tc>, window_params = [{transform_indices = @transform_0, window_bounds = array<i64: 1, 32, 128>}, {pipeline_mode = #tpu.pipeline_mode<synchronous>, transform_indices = @transform_1, window_bounds = array<i64: 128, 256>}, {pipeline_mode = #tpu.pipeline_mode<synchronous>, transform_indices = @transform_2, window_bounds = array<i64: 1, 256>}, {pipeline_mode = #tpu.pipeline_mode<synchronous>, transform_indices = @transform_3, window_bounds = array<i64: 1, 256>}, {pipeline_mode = #tpu.pipeline_mode<synchronous>, transform_indices = @transform_4, window_bounds = array<i64: 3, 256>}, {pipeline_mode = #tpu.pipeline_mode<synchronous>, transform_indices = @transform_5, window_bounds = array<i64: 1, 256>}, {pipeline_mode = #tpu.pipeline_mode<synchronous>, transform_indices = @transform_6, window_bounds = array<i64: 1, 256>}, {pipeline_mode = #tpu.pipeline_mode<synchronous>, transform_indices = @transform_7, window_bounds = array<i64: 256, 128>}, {pipeline_mode = #tpu.pipeline_mode<synchronous>, transform_indices = @transform_8, window_bounds = array<i64: 2, 2>}, {transform_indices = @transform_9, window_bounds = array<i64: 1>}, {transform_indices = @transform_10, window_bounds = array<i64: 1>}, {transform_indices = @transform_11, window_bounds = array<i64: 1, 32, 128>}]} {
    %c0 = arith.constant 0 : index
    %c0_0 = arith.constant 0 : index
    %c0_1 = arith.constant 0 : index
    %0 = vector.load %arg1[%c0, %c0_0, %c0_1] : memref<1x32x128xf32, #tpu.memory_space<vmem>>, vector<1x32x128xf32>
    %1 = vector.shape_cast %0 : vector<1x32x128xf32> to vector<32x128xf32>
    %c0_2 = arith.constant 0 : index
    %2 = memref.load %arg10[%c0_2] : memref<1xf32, #tpu.memory_space<smem>>
    %c0_3 = arith.constant 0 : index
    %3 = memref.load %arg11[%c0_3] : memref<1xf32, #tpu.memory_space<smem>>
    %c0_4 = arith.constant 0 : index
    %c0_5 = arith.constant 0 : index
    %4 = vector.load %arg2[%c0_4, %c0_5] : memref<128x256xf32, #tpu.memory_space<vmem>>, vector<128x256xf32>
    %cst = arith.constant dense<0.000000e+00> : vector<32x256xf32>
    %5 = tpu.matmul %1, %4, %cst {dimension_numbers = #tpu.dot_dimension_numbers<[1], [0], [0], [1], [0, 0, 1, 1], [], []>} : vector<32x128xf32>, vector<128x256xf32>, vector<32x256xf32> -> vector<32x256xf32>
    %cst_6 = arith.constant 0.000000e+00 : f32
    %6 = vector.broadcast %cst_6 : f32 to vector<32x256xf32>
    %7 = arith.cmpf ogt, %5, %6 : vector<32x256xf32>
    %8 = vector.broadcast %2 : f32 to vector<32x256xf32>
    %9 = arith.mulf %8, %5 : vector<32x256xf32>
    %10 = arith.select %7, %5, %9 : vector<32x256xi1>, vector<32x256xf32>
    %11 = vector.shape_cast %10 : vector<32x256xf32> to vector<1x32x256xf32>
    %cst_7 = arith.constant dense<0.000000e+00> : vector<1xf32>
    %12 = vector.multi_reduction <add>, %11, %cst_7 [1, 2] : vector<1x32x256xf32> to vector<1xf32>
    %13 = vector.shape_cast %12 : vector<1xf32> to vector<1x1x1xf32>
    %14 = vector.extract %13[0, 0, 0] : f32 from vector<1x1x1xf32>
    %15 = vector.broadcast %14 : f32 to vector<1x1xf32>
    %16 = arith.mulf %10, %10 : vector<32x256xf32>
    %17 = vector.shape_cast %16 : vector<32x256xf32> to vector<1x32x256xf32>
    %cst_8 = arith.constant dense<0.000000e+00> : vector<1xf32>
    %18 = vector.multi_reduction <add>, %17, %cst_8 [1, 2] : vector<1x32x256xf32> to vector<1xf32>
    %19 = vector.shape_cast %18 : vector<1xf32> to vector<1x1x1xf32>
    %20 = vector.extract %19[0, 0, 0] : f32 from vector<1x1x1xf32>
    %21 = vector.broadcast %20 : f32 to vector<1x1xf32>
    %cst_9 = arith.constant 1.22070313E-4 : f32
    %22 = vector.broadcast %cst_9 : f32 to vector<1x1xf32>
    %23 = arith.mulf %15, %22 : vector<1x1xf32>
    %cst_10 = arith.constant 1.22070313E-4 : f32
    %24 = vector.broadcast %cst_10 : f32 to vector<1x1xf32>
    %25 = arith.mulf %21, %24 : vector<1x1xf32>
    %26 = arith.mulf %23, %23 : vector<1x1xf32>
    %27 = arith.subf %25, %26 : vector<1x1xf32>
    %cst_11 = arith.constant 9.99999993E-9 : f32
    %28 = vector.broadcast %cst_11 : f32 to vector<1x1xf32>
    %29 = arith.addf %27, %28 : vector<1x1xf32>
    %30 = math.rsqrt %29 : vector<1x1xf32>
    %c0_12 = arith.constant 0 : index
    %c0_13 = arith.constant 0 : index
    %31 = vector.load %arg3[%c0_12, %c0_13] : memref<1x256xf32, #tpu.memory_space<vmem>>, vector<1x256xf32>
    %32 = vector.broadcast %30 : vector<1x1xf32> to vector<1x256xf32>
    %33 = arith.mulf %31, %32 : vector<1x256xf32>
    %c0_14 = arith.constant 0 : index
    %c0_15 = arith.constant 0 : index
    %34 = vector.load %arg4[%c0_14, %c0_15] : memref<1x256xf32, #tpu.memory_space<vmem>>, vector<1x256xf32>
    %35 = vector.broadcast %23 : vector<1x1xf32> to vector<1x256xf32>
    %36 = arith.mulf %35, %33 : vector<1x256xf32>
    %37 = arith.subf %34, %36 : vector<1x256xf32>
    %38 = vector.broadcast %33 : vector<1x256xf32> to vector<32x256xf32>
    %39 = arith.mulf %10, %38 : vector<32x256xf32>
    %40 = vector.broadcast %37 : vector<1x256xf32> to vector<32x256xf32>
    %41 = arith.addf %39, %40 : vector<32x256xf32>
    %c0_16 = arith.constant 0 : index
    %c0_17 = arith.constant 0 : index
    %42 = vector.load %arg9[%c0_16, %c0_17] : memref<2x2xf32, #tpu.memory_space<vmem>>, vector<2x2xf32>
    %43 = vector.extract_strided_slice %41 {offsets = [1, 0], sizes = [2, 256], strides = [1, 1]} : vector<32x256xf32> to vector<2x256xf32>
    %cst_18 = arith.constant dense<0.000000e+00> : vector<2x256xf32>
    %44 = tpu.matmul %42, %43, %cst_18 {dimension_numbers = #tpu.dot_dimension_numbers<[1], [0], [0], [1], [0, 0, 1, 1], [], []>} : vector<2x2xf32>, vector<2x256xf32>, vector<2x256xf32> -> vector<2x256xf32>
    %45 = vector.extract_strided_slice %41 {offsets = [29, 0], sizes = [2, 256], strides = [1, 1]} : vector<32x256xf32> to vector<2x256xf32>
    %cst_19 = arith.constant dense<0.000000e+00> : vector<2x256xf32>
    %46 = tpu.matmul %42, %45, %cst_19 {dimension_numbers = #tpu.dot_dimension_numbers<[1], [0], [0], [1], [0, 0, 1, 1], [], []>} : vector<2x2xf32>, vector<2x256xf32>, vector<2x256xf32> -> vector<2x256xf32>
    %47 = tpu.concatenate %44, %41, %46 in 0 : vector<2x256xf32>, vector<32x256xf32>, vector<2x256xf32> -> vector<36x256xf32>
    %c0_20 = arith.constant 0 : index
    %c0_21 = arith.constant 0 : index
    %48 = vector.load %arg5[%c0_20, %c0_21] : memref<3x256xf32, #tpu.memory_space<vmem>>, vector<3x256xf32>
    %49 = vector.extract_strided_slice %48 {offsets = [0, 0], sizes = [1, 256], strides = [1, 1]} : vector<3x256xf32> to vector<1x256xf32>
    %50 = vector.extract_strided_slice %47 {offsets = [0, 0], sizes = [32, 256], strides = [1, 1]} : vector<36x256xf32> to vector<32x256xf32>
    %51 = vector.broadcast %49 : vector<1x256xf32> to vector<32x256xf32>
    %52 = arith.mulf %51, %50 : vector<32x256xf32>
    %53 = vector.extract_strided_slice %48 {offsets = [1, 0], sizes = [1, 256], strides = [1, 1]} : vector<3x256xf32> to vector<1x256xf32>
    %54 = vector.extract_strided_slice %47 {offsets = [2, 0], sizes = [32, 256], strides = [1, 1]} : vector<36x256xf32> to vector<32x256xf32>
    %55 = vector.broadcast %53 : vector<1x256xf32> to vector<32x256xf32>
    %56 = arith.mulf %55, %54 : vector<32x256xf32>
    %57 = arith.addf %52, %56 : vector<32x256xf32>
    %58 = vector.extract_strided_slice %48 {offsets = [2, 0], sizes = [1, 256], strides = [1, 1]} : vector<3x256xf32> to vector<1x256xf32>
    %59 = vector.extract_strided_slice %47 {offsets = [4, 0], sizes = [32, 256], strides = [1, 1]} : vector<36x256xf32> to vector<32x256xf32>
    %60 = vector.broadcast %58 : vector<1x256xf32> to vector<32x256xf32>
    %61 = arith.mulf %60, %59 : vector<32x256xf32>
    %62 = arith.addf %57, %61 : vector<32x256xf32>
    %cst_22 = arith.constant 0.000000e+00 : f32
    %63 = vector.broadcast %cst_22 : f32 to vector<32x256xf32>
    %64 = arith.cmpf ogt, %62, %63 : vector<32x256xf32>
    %65 = vector.broadcast %3 : f32 to vector<32x256xf32>
    %66 = arith.mulf %65, %62 : vector<32x256xf32>
    %67 = arith.select %64, %62, %66 : vector<32x256xi1>, vector<32x256xf32>
    %68 = vector.shape_cast %67 : vector<32x256xf32> to vector<1x32x256xf32>
    %cst_23 = arith.constant dense<0.000000e+00> : vector<1xf32>
    %69 = vector.multi_reduction <add>, %68, %cst_23 [1, 2] : vector<1x32x256xf32> to vector<1xf32>
    %70 = vector.shape_cast %69 : vector<1xf32> to vector<1x1x1xf32>
    %71 = vector.extract %70[0, 0, 0] : f32 from vector<1x1x1xf32>
    %72 = vector.broadcast %71 : f32 to vector<1x1xf32>
    %73 = arith.mulf %67, %67 : vector<32x256xf32>
    %74 = vector.shape_cast %73 : vector<32x256xf32> to vector<1x32x256xf32>
    %cst_24 = arith.constant dense<0.000000e+00> : vector<1xf32>
    %75 = vector.multi_reduction <add>, %74, %cst_24 [1, 2] : vector<1x32x256xf32> to vector<1xf32>
    %76 = vector.shape_cast %75 : vector<1xf32> to vector<1x1x1xf32>
    %77 = vector.extract %76[0, 0, 0] : f32 from vector<1x1x1xf32>
    %78 = vector.broadcast %77 : f32 to vector<1x1xf32>
    %cst_25 = arith.constant 1.22070313E-4 : f32
    %79 = vector.broadcast %cst_25 : f32 to vector<1x1xf32>
    %80 = arith.mulf %72, %79 : vector<1x1xf32>
    %cst_26 = arith.constant 1.22070313E-4 : f32
    %81 = vector.broadcast %cst_26 : f32 to vector<1x1xf32>
    %82 = arith.mulf %78, %81 : vector<1x1xf32>
    %83 = arith.mulf %80, %80 : vector<1x1xf32>
    %84 = arith.subf %82, %83 : vector<1x1xf32>
    %cst_27 = arith.constant 9.99999993E-9 : f32
    %85 = vector.broadcast %cst_27 : f32 to vector<1x1xf32>
    %86 = arith.addf %84, %85 : vector<1x1xf32>
    %87 = math.rsqrt %86 : vector<1x1xf32>
    %c0_28 = arith.constant 0 : index
    %c0_29 = arith.constant 0 : index
    %88 = vector.load %arg6[%c0_28, %c0_29] : memref<1x256xf32, #tpu.memory_space<vmem>>, vector<1x256xf32>
    %89 = vector.broadcast %87 : vector<1x1xf32> to vector<1x256xf32>
    %90 = arith.mulf %88, %89 : vector<1x256xf32>
    %c0_30 = arith.constant 0 : index
    %c0_31 = arith.constant 0 : index
    %91 = vector.load %arg7[%c0_30, %c0_31] : memref<1x256xf32, #tpu.memory_space<vmem>>, vector<1x256xf32>
    %92 = vector.broadcast %80 : vector<1x1xf32> to vector<1x256xf32>
    %93 = arith.mulf %92, %90 : vector<1x256xf32>
    %94 = arith.subf %91, %93 : vector<1x256xf32>
    %95 = vector.broadcast %90 : vector<1x256xf32> to vector<32x256xf32>
    %96 = arith.mulf %67, %95 : vector<32x256xf32>
    %97 = vector.broadcast %94 : vector<1x256xf32> to vector<32x256xf32>
    %98 = arith.addf %96, %97 : vector<32x256xf32>
    %c0_32 = arith.constant 0 : index
    %c0_33 = arith.constant 0 : index
    %99 = vector.load %arg8[%c0_32, %c0_33] : memref<256x128xf32, #tpu.memory_space<vmem>>, vector<256x128xf32>
    %cst_34 = arith.constant dense<0.000000e+00> : vector<32x128xf32>
    %100 = tpu.matmul %98, %99, %cst_34 {dimension_numbers = #tpu.dot_dimension_numbers<[1], [0], [0], [1], [0, 0, 1, 1], [], []>} : vector<32x256xf32>, vector<256x128xf32>, vector<32x128xf32> -> vector<32x128xf32>
    %101 = arith.addf %100, %1 : vector<32x128xf32>
    %c0_35 = arith.constant 0 : index
    %c0_36 = arith.constant 0 : index
    %c0_37 = arith.constant 0 : index
    %102 = vector.load %arg12[%c0_35, %c0_36, %c0_37] : memref<1x32x128xf32, #tpu.memory_space<vmem>>, vector<1x32x128xf32>
    %103 = vector.shape_cast %102 : vector<1x32x128xf32> to vector<32x128xf32>
    %104 = vector.shape_cast %101 : vector<32x128xf32> to vector<1x32x128xf32>
    tpu.vector_store %arg12[%c0_35, %c0_36, %c0_37], %104 {strides = array<i32>} : memref<1x32x128xf32, #tpu.memory_space<vmem>>, vector<1x32x128xf32>,
    return
  }
  func.func @transform_0(%arg0: i32) -> (i32, i32, i32) {
    %c0_i32 = arith.constant 0 : i32
    %c0_i32_0 = arith.constant 0 : i32
    %c0_i32_1 = arith.constant 0 : i32
    return %arg0, %c0_i32, %c0_i32_0 : i32, i32, i32
  }
  func.func @transform_1(%arg0: i32) -> (i32, i32) {
    %c0_i32 = arith.constant 0 : i32
    %c0_i32_0 = arith.constant 0 : i32
    %c0_i32_1 = arith.constant 0 : i32
    return %c0_i32, %c0_i32_0 : i32, i32
  }
  func.func @transform_2(%arg0: i32) -> (i32, i32) {
    %c0_i32 = arith.constant 0 : i32
    %c0_i32_0 = arith.constant 0 : i32
    %c0_i32_1 = arith.constant 0 : i32
    return %c0_i32, %c0_i32_0 : i32, i32
  }
  func.func @transform_3(%arg0: i32) -> (i32, i32) {
    %c0_i32 = arith.constant 0 : i32
    %c0_i32_0 = arith.constant 0 : i32
    %c0_i32_1 = arith.constant 0 : i32
    return %c0_i32, %c0_i32_0 : i32, i32
  }
  func.func @transform_4(%arg0: i32) -> (i32, i32) {
    %c0_i32 = arith.constant 0 : i32
    %c0_i32_0 = arith.constant 0 : i32
    %c0_i32_1 = arith.constant 0 : i32
    return %c0_i32, %c0_i32_0 : i32, i32
  }
  func.func @transform_5(%arg0: i32) -> (i32, i32) {
    %c0_i32 = arith.constant 0 : i32
    %c0_i32_0 = arith.constant 0 : i32
    %c0_i32_1 = arith.constant 0 : i32
    return %c0_i32, %c0_i32_0 : i32, i32
  }
  func.func @transform_6(%arg0: i32) -> (i32, i32) {
    %c0_i32 = arith.constant 0 : i32
    %c0_i32_0 = arith.constant 0 : i32
    %c0_i32_1 = arith.constant 0 : i32
    return %c0_i32, %c0_i32_0 : i32, i32
  }
  func.func @transform_7(%arg0: i32) -> (i32, i32) {
    %c0_i32 = arith.constant 0 : i32
    %c0_i32_0 = arith.constant 0 : i32
    %c0_i32_1 = arith.constant 0 : i32
    return %c0_i32, %c0_i32_0 : i32, i32
  }
  func.func @transform_8(%arg0: i32) -> (i32, i32) {
    %c0_i32 = arith.constant 0 : i32
    %c0_i32_0 = arith.constant 0 : i32
    %c0_i32_1 = arith.constant 0 : i32
    return %c0_i32, %c0_i32_0 : i32, i32
  }
  func.func @transform_9(%arg0: i32) -> i32 {
    %c0_i32 = arith.constant 0 : i32
    %c0_i32_0 = arith.constant 0 : i32
    return %c0_i32 : i32
  }
  func.func @transform_10(%arg0: i32) -> i32 {
    %c0_i32 = arith.constant 0 : i32
    %c0_i32_0 = arith.constant 0 : i32
    return %c0_i32 : i32
  }
  func.func @transform_11(%arg0: i32) -> (i32, i32, i32) {
    %c0_i32 = arith.constant 0 : i32
    %c0_i32_0 = arith.constant 0 : i32
    %c0_i32_1 = arith.constant 0 : i32
    return %arg0, %c0_i32, %c0_i32_0 : i32, i32, i32
  }
}

</mosaic_0001>

<bundles_post_ra>
// kernel: tpu_custom_call.1
= control target key start
LH: loop header
LB: loop body
LE: loop exit
PB: predicated region body
PF: predicated region fallthrough
CT: control target
= control target key end

     0   :  { %s2146_s0 = inlined_call_operand.hbm [shape: f32[2,32,128], index: 0, kind: input, shape index: {}]   ;;  %s2147_s1 = inlined_call_operand.hbm [shape: f32[128,256], index: 1, kind: input, shape index: {}]   ;;  %s2148_s2 = inlined_call_operand.vmem [shape: f32[1,256], index: 2, kind: input, shape index: {}]   ;;  %s2149_s3 = inlined_call_operand.vmem [shape: f32[1,256], index: 3, kind: input, shape index: {}]   ;;  %s2150_s4 = inlined_call_operand.hbm [shape: f32[3,256], index: 4, kind: input, shape index: {}]   ;;  %s2151_s5 = inlined_call_operand.vmem [shape: f32[1,256], index: 5, kind: input, shape index: {}]   ;;  %s2152_s6 = inlined_call_operand.vmem [shape: f32[1,256], index: 6, kind: input, shape index: {}]   ;;  %s2153_s7 = inlined_call_operand.hbm [shape: f32[256,128], index: 7, kind: input, shape index: {}]   ;;  %s2154_s8 = inlined_call_operand.vmem [shape: f32[2,2], index: 8, kind: input, shape index: {}]   ;;  %s2155_s9 = inlined_call_operand.<no memory space> [shape: f32[1], index: 9, kind: input, shape index: {}]   ;;  %s2156_s10 = inlined_call_operand.<no memory space> [shape: f32[1], index: 10, kind: input, shape index: {}]   ;;  %s2157_s11 = inlined_call_operand.hbm [shape: f32[2,32,128], index: 11, kind: output, shape index: {}]  }
   0x1   :  { %2160 = sst [smem:[#allocation17_spill]] %s2147_s1 }
   0x2   :  { %2161 = sst [smem:[#allocation18_spill]] %s2150_s4 }
   0x3   :  { %2162 = sst [smem:[#allocation19_spill]] %s2153_s7 }
   0x4   :  { %16 = sst [smem:[#allocation2]] %s2155_s9 }
   0x5   :  { %17 = sst [smem:[#allocation3]] %s2156_s10 }
   0x6   :  { %18 = vsyncpa [#allocation5], 0 }
   0x7   :  { %20 = vsyncpa [#allocation5 + $0x1], 0 }
   0x8   :  { %21 = vsyncpa [#allocation8], 0 }
   0x9   :  { %22 = vsyncpa [#allocation11], 0 }
   0xa   :  { %23 = vsyncpa [#allocation6], 0 }
   0xb   :  { %25 = vsyncpa [#allocation6 + $0x1], 0  ;;  %s1665_s21 = smov 0   ;;  %s1667_s22 = smov 0  }
   0xc   :  { %s1669_s23 = smov 0   ;;  %s1671_s24 = smov 0  }
   0xd LB: > { %s1686_s9 = sadd.s32 4294967295, %s1588_s24   ;;  %s1269_s10 = sadd.s32 4294967294, %s1588_s24   ;;  %s1588_s24 = sphi %s1671_s24, %s2178_s24   ;;  %s1584_s23 = sphi %s1669_s23, %s2177_s23   ;;  %s1580_s22 = sphi %s1667_s22, %s2176_s22   ;;  %s1576_s21 = sphi %s1665_s21, %s2175_s21  }
   0xe   : > { %p51_p0 = scmp.ne.s32.totalorder %s1580_s22, %s1576_s21  ;;  %p52_p1 = scmp.eq.s32.totalorder %s1686_s9, 0 }
   0xf   : > { %p285_p2 = scmp.eq.s32.totalorder %s1686_s9, 1  ;;  %p291_p3 = scmp.eq.s32.totalorder %s1269_s10, 1 }
  0x10   : > { %p1695_p4 = por %p52_p1, %p51_p0  ;;  %p1270_p5 = scmp.ge.s32.totalorder %s1588_s24, 1 }
  0x11   : > { %p1700_p6 = por %p291_p3, %p51_p0  ;;  %p298_p7 = scmp.lt.s32.totalorder %s1588_s24, 3 }
  0x12   : > { %s2165_s1 = sld [smem:[#allocation17_spill]]  ;;  %s1590_s12 = smov [#allocation7]  }
  0x13   : > { %p1708_p8 = pnand %p1270_p5, %p298_p7  ;;  %s311_s13 = sshll.u32 %s1590_s12, 4  ;;  %s312_s13 = int_to_ptr.vmem [resolvable:$true] %s311_s13 }
  0x14   : > { %s2168_s4 = sld [smem:[#allocation18_spill]]  ;;  %s1591_s18 = smov 256  }
  0x15   : > { %p1323_p9 = pneg %p1708_p8  ;;  %s1592_s19 = smov 16  }
  0x16   : > { %s1593_s20 = smov [#allocation9]   ;;  %s2169_s7 = sld [smem:[#allocation19_spill]] }
  0x17   : > { %p1716_p10 = pnand %p1323_p9, %p52_p1  ;;  %s332_s10 = sshll.u32 %s1593_s20, 4  ;;  %s333_s10 = int_to_ptr.vmem [resolvable:$true] %s332_s10 }
  0x18   : > { %s309_s29 = sshll.u32 %s2165_s1, 4  ;;  %s1594_s15 = smov [#allocation10]   ;;  %s310_s29 = int_to_ptr.hbm [resolvable:$true] %s309_s29 }
  0x19   : > { %1326 = dma.hbm_to_vmem [thread:$0]  (!%p1716_p10), %s310_s29, 4096, %s312_s13, [#allocation8], %s1591_s18, %s1591_s18, %s1592_s19  }
  0x1a   : > { %s330_s17 = sshll.u32 %s2168_s4, 4  ;;  %s349_s29 = sshll.u32 %s1594_s15, 4  ;;  %s331_s17 = int_to_ptr.hbm [resolvable:$true] %s330_s17  ;;  %s350_s29 = int_to_ptr.vmem [resolvable:$true] %s349_s29 }
  0x1b   : > { %1329 = dma.hbm_to_vmem [thread:$0]  (!%p1716_p10), %s331_s17, 128, %s333_s10, [#allocation8]  }
  0x1c   : > { %s347_s12 = sshll.u32 %s2169_s7, 4  ;;  %s2158_s13 = smov 128   ;;  %s348_s12 = int_to_ptr.hbm [resolvable:$true] %s347_s12 }
  0x1d   : > { %s2159_s16 = smov 8   ;;  %s1737_s18 = sadd.s32 1, %s1588_s24  }
  0x1e   : > { %1332 = dma.hbm_to_vmem [thread:$0]  (!%p1716_p10), %s348_s12, 4096, %s350_s29, [#allocation11], %s2158_s13, %s2158_s13, %s2159_s16  }
  0x1f   : > { %s35_s19 = ssub.s32 %s1588_s24, %s1737_s18  ;;  %s38_s20 = sadd.s32 1, %s1584_s23 }
  0x20   : > { %p36_p12 = scmp.eq.s32.totalorder %s35_s19, 0  ;;  %p45_p13 = scmp.ne.s32.totalorder %s1584_s23, %s1580_s22 }
  0x21   : > { %p46_p0 = scmp.eq.s32.totalorder %s1588_s24, 0  ;;  %p1344_p5 = scmp.lt.s32.totalorder %s1588_s24, 2 }
  0x22   : > { %s1746_s17 = scalar_select %p36_p12, %s1584_s23, %s38_s20  }
  0x23   : > { %p1750_p3 = por %p285_p2, %p45_p13  ;;  %s372_s14 = sand.u32 1, %s1584_s23  }
  0x24   : > { %s1297_s27 = sshll.u32 %s1588_s24, 5  ;;  %p47_p7 = por %p46_p0, %p45_p13 }
  0x25   : > { %s1275_s28 = sshll.u32 %s372_s14, 5  ;;  %s381_s29 = scalar_lea.hbm %s2146_s0, %s1297_s27 }
  0x26   : > { %s382_s13 = sshll.u32 %s381_s29, 4  ;;  %s376_s19 = scalar_lea.vmem [#allocation4], %s1275_s28  ;;  %s383_s13 = int_to_ptr.hbm [resolvable:$true] %s382_s13 }
  0x27   : > { %s384_s16 = sshll.u32 %s376_s19, 4  ;;  %p1760_p9 = pnand %p1344_p5, %p47_p7  ;;  %s385_s16 = int_to_ptr.vmem [resolvable:$true] %s384_s16 }
  0x28   : > { %s373_s1 = scalar_lea.sflag [#allocation5], %s372_s14  ;;  %s1484_s4 = sshra.s32 %s383_s13, 4  ;;  %s1485_s4 = int_to_ptr.hbm [resolvable:$true] %s1484_s4 }
  0x29   : > { %s1486_s7 = scalar_lea.hbm %s1485_s4, 32  ;;  %p1488_p10 = pneg %p1760_p9 }
  0x2a   : > { %p1487_p2 = scmp.ne.s32.totalorder %s1485_s4, %s1486_s7  ;;  %s1491_s28 = scalar_lea.hbm %s2146_s0, 64 }
  0x2b   : > { %p1492_p0 = scmp.lt.s32.totalorder %s1485_s4, %s2146_s0  ;;  %p1493_p5 = scmp.lt.s32.totalorder %s1491_s28, %s1486_s7 }
  0x2c   : > { %p1489_p12 = pnand %p1488_p10, %p1487_p2 }
  0x2d   : > { %p1494_p7 = por %p1493_p5, %p1492_p0 }
  0x2e   : > { %p1490_p13 = pneg %p1489_p12 }
  0x30   : > { %p1495_p11 = pnand %p1494_p7, %p1490_p13 }
  0x32   : > { %1498 = shalt.err (!%p1495_p11)
}
  0x33   : > { %s2172_s14 = smov 8   ;;  %s2173_s19 = smov 128  }
  0x34   : > { %1336 = dma.hbm_to_vmem [thread:$0]  (!%p1760_p9), %s383_s13, 512, %s385_s16, %s373_s1, %s2173_s19, %s2173_s19, %s2172_s14  }
  0x35   : > { %396 = sbr.rel (%p1708_p8) target bundleno = 1017 (0x3f9), region = 64  ;;  %s1780_s27 = sand.u32 (!%p1708_p8), 1, %s1580_s22  }
  0x36   : > { %s1279_s4 = sshll.u32 (!%p1708_p8), %s1780_s27, 5  ;;  %s399_s7 = scalar_lea.sflag (!%p1708_p8), [#allocation5], %s1780_s27 }
  0x37   : > { %s1786_s12 = scalar_lea.vmem (!%p1708_p8), [#allocation4], %s1279_s4 }
  0x3a   : > { %1559 = dma.done.wait (%p1695_p4), %s399_s7, 512  }
  0x3b   : > { %1561 = vsyncadd (%p1695_p4), %s399_s7, 4294966784 }
  0x3c   : > { %1563 = dma.done.wait (%p52_p1), [#allocation8], 4224  }
  0x3d   : > { %1565 = vsyncadd (%p52_p1), [#allocation8], 4294963072 }
  0x3e   : > { %1567 = dma.done.wait (%p52_p1), [#allocation11], 4096  }
  0x3f   : > { %1569 = vsyncadd (%p52_p1), [#allocation11], 4294963200  ;;  %v493_v0 = vld [vmem:[#allocation7 + $0xf0] sm:$0xff]  ;;  %v494_v1 = vld [vmem:[#allocation7 + $0xf8] sm:$0xff]  ;;  %s461_s1 = sld [smem:[#allocation2]]  ;;  %vm675_vm11 = vcmask 1041408  }
  0x40   : > { %v491_v2 = vld [vmem:[#allocation7 + $0xe0] sm:$0xff]  ;;  %495 = vmatpush.msra.mxu0 %v493_v0  ;;  %524 = vmatpush.msra.mxu1 %v494_v1  ;;  %v492_v3 = vld [vmem:[#allocation7 + $0xe8] sm:$0xff]  ;;  %v489_v4 = vld [vmem:[#allocation7 + $0xd0] sm:$0xff]  ;;  %vm671_vm12 = vcmask 15360   ;;  %vm848_vm13 = vcmask 1045504   ;;  %vm909_vm14 = vcmask 1043456  }
  0x41   : > { %v490_v5 = vld [vmem:[#allocation7 + $0xd8] sm:$0xff]  ;;  %v487_v6 = vld [vmem:[#allocation7 + $0xc0] sm:$0xff]  ;;  %v488_v7 = vld [vmem:[#allocation7 + $0xc8] sm:$0xff]  ;;  %s462_s14 = sld [smem:[#allocation3]]  ;;  %s456_s13 = scalar_lea.vmem [#allocation12], %s1279_s4 }
  0x42   : > { %496 = vmatpush.msra.mxu0 %v491_v2  ;;  %525 = vmatpush.msra.mxu1 %v492_v3  ;;  %v485_v8 = vld [vmem:[#allocation7 + $0xb0] sm:$0xff]  ;;  %v486_v9 = vld [vmem:[#allocation7 + $0xb8] sm:$0xff]  ;;  %v483_v10 = vld [vmem:[#allocation7 + $0xa0] sm:$0xff]  ;;  %s1298_s16 = sshll.u32 %s1686_s9, 5  ;;  %s1164_s15 = sshll.u32 %s456_s13, 4  ;;  %s1165_s15 = int_to_ptr.vmem [resolvable:$true] %s1164_s15 }
  0x43   : > { %v484_v11 = vld [vmem:[#allocation7 + $0xa8] sm:$0xff]  ;;  %v481_v12 = vld [vmem:[#allocation7 + $0x90] sm:$0xff]  ;;  %v482_v13 = vld [vmem:[#allocation7 + $0x98] sm:$0xff]  ;;  %s1163_s4 = scalar_lea.hbm %s2157_s11, %s1298_s16 }
  0x44   : > { %497 = vmatpush.msra.mxu0 %v489_v4  ;;  %526 = vmatpush.msra.mxu1 %v490_v5  ;;  %v479_v14 = vld [vmem:[#allocation7 + $0x80] sm:$0xff]  ;;  %v480_v15 = vld [vmem:[#allocation7 + $0x88] sm:$0xff]  ;;  %v477_v16 = vld [vmem:[#allocation7 + $0x70] sm:$0xff]  ;;  %s1166_s29 = sshll.u32 %s1163_s4, 4  ;;  %s1167_s29 = int_to_ptr.hbm [resolvable:$true] %s1166_s29 }
  0x45   : > { %v478_v17 = vld [vmem:[#allocation7 + $0x78] sm:$0xff]  ;;  %v475_v18 = vld [vmem:[#allocation7 + $0x60] sm:$0xff]  ;;  %v476_v19 = vld [vmem:[#allocation7 + $0x68] sm:$0xff]  ;;  %v561_v38 = vstv %s461_s1  ;;  %s1534_s1 = scalar_lea.hbm %s2157_s11, 64 }
  0x46   : > { %498 = vmatpush.msra.mxu0 %v487_v6  ;;  %527 = vmatpush.msra.mxu1 %v488_v7  ;;  %v473_v20 = vld [vmem:[#allocation7 + $0x50] sm:$0xff]  ;;  %v474_v21 = vld [vmem:[#allocation7 + $0x58] sm:$0xff]  ;;  %v471_v22 = vld [vmem:[#allocation7 + $0x40] sm:$0xff] }
  0x47   : > { %v472_v23 = vld [vmem:[#allocation7 + $0x48] sm:$0xff]  ;;  %v469_v24 = vld [vmem:[#allocation7 + $0x30] sm:$0xff]  ;;  %v470_v25 = vld [vmem:[#allocation7 + $0x38] sm:$0xff] }
  0x48   : > { %499 = vmatpush.msra.mxu0 %v485_v8  ;;  %528 = vmatpush.msra.mxu1 %v486_v9  ;;  %v467_v26 = vld [vmem:[#allocation7 + $0x20] sm:$0xff]  ;;  %v468_v27 = vld [vmem:[#allocation7 + $0x28] sm:$0xff]  ;;  %v465_v28 = vld [vmem:[#allocation7 + $0x10] sm:$0xff] }
  0x49   : > { %v466_v29 = vld [vmem:[#allocation7 + $0x18] sm:$0xff]  ;;  %v463_v30 = vld [vmem:[#allocation7] sm:$0xff]  ;;  %v464_v31 = vld [vmem:[#allocation7 + $0x8] sm:$0xff] }
  0x4a   : > { %500 = vmatpush.msra.mxu0 %v483_v10  ;;  %529 = vmatpush.msra.mxu1 %v484_v11  ;;  %v1801_v32 = vld [vmem:[%s1786_s12] sm:$0xff]  ;;  %v1806_v33 = vld [vmem:[%s1786_s12 + $0x8] sm:$0xff]  ;;  %v1811_v34 = vld [vmem:[%s1786_s12 + $0x10] sm:$0xff] }
  0x4b   : > { %v1816_v35 = vld [vmem:[%s1786_s12 + $0x18] sm:$0xff] }
  0x4c   : > { %501 = vmatpush.msra.mxu0 %v481_v12  ;;  %530 = vmatpush.msra.mxu1 %v482_v13 }
  0x4e   : > { %502 = vmatpush.msra.mxu0 %v479_v14  ;;  %531 = vmatpush.msra.mxu1 %v480_v15 }
  0x50   : > { %503 = vmatpush.msra.mxu0 %v477_v16  ;;  %532 = vmatpush.msra.mxu1 %v478_v17 }
  0x52   : > { %504 = vmatpush.msra.mxu0 %v475_v18  ;;  %533 = vmatpush.msra.mxu1 %v476_v19 }
  0x54   : > { %505 = vmatpush.msra.mxu0 %v473_v20  ;;  %534 = vmatpush.msra.mxu1 %v474_v21 }
  0x56   : > { %506 = vmatpush.msra.mxu0 %v471_v22  ;;  %535 = vmatpush.msra.mxu1 %v472_v23 }
  0x58   : > { %507 = vmatpush.msra.mxu0 %v469_v24  ;;  %536 = vmatpush.msra.mxu1 %v470_v25 }
  0x5a   : > { %508 = vmatpush.msra.mxu0 %v467_v26  ;;  %537 = vmatpush.msra.mxu1 %v468_v27 }
  0x5c   : > { %509 = vmatpush.msra.mxu0 %v465_v28  ;;  %538 = vmatpush.msra.mxu1 %v466_v29 }
  0x5e   : > { %510 = vmatpush.msra.mxu0 %v463_v30  ;;  %539 = vmatpush.msra.mxu1 %v464_v31 }
  0x5f   : > { %511 = vmatmul.f32.vlgmr.msra.gmra.mxu0 %v1801_v32  ;;  %540 = vmatmul.f32.vlgmr.msra.gmra.mxu1 %v1801_v32 }
  0x67   : > { %514 = vmatmul.f32.gmra.mxu0 %v1806_v33  ;;  %543 = vmatmul.f32.gmra.mxu1 %v1806_v33 }
  0x6f   : > { %517 = vmatmul.f32.gmra.mxu0 %v1811_v34  ;;  %546 = vmatmul.f32.gmra.mxu1 %v1811_v34 }
  0x77   : > { %520 = vmatmul.f32.gmra.mxu0 %v1816_v35  ;;  %549 = vmatmul.f32.gmra.mxu1 %v1816_v35 }
  0xdc   : > { %v512_v36 = vpop.f32.mrf.mxu0  ;;  %v541_v37 = vpop.f32.mrf.mxu1 }
  0xdd   : > { %v562_v39 = vmul.f32 %v561_v38, %v512_v36  ;;  %v563_v40 = vmul.f32 %v561_v38, %v541_v37  ;;  %vm553_vm0 = vcmp.gt.f32.partialorder %v512_v36, 0.0  ;;  %vm554_vm1 = vcmp.gt.f32.partialorder %v541_v37, 0.0 }
  0xdf   : > { %v1820_v44 = vsel %vm553_vm0, %v512_v36, %v562_v39  ;;  %v1822_v45 = vsel %vm554_vm1, %v541_v37, %v563_v40 }
  0xe0   : > { %v578_v47 = vadd.f32 %v1822_v45, %v1820_v44  ;;  %v595_v49 = vmul.f32 %v1820_v44, %v1820_v44  ;;  %v596_v50 = vmul.f32 %v1822_v45, %v1822_v45 }
  0xe2   : > { %v603_v58 = vadd.f32 %v596_v50, %v595_v49 }
  0xe4   : > { %v515_v41 = vpop.f32.mrf.mxu0  ;;  %v544_v42 = vpop.f32.mrf.mxu1 }
  0xe5   : > { %v564_v43 = vmul.f32 %v561_v38, %v515_v41  ;;  %vm555_vm2 = vcmp.gt.f32.partialorder %v515_v41, 0.0  ;;  %v565_v48 = vmul.f32 %v561_v38, %v544_v42  ;;  %vm556_vm3 = vcmp.gt.f32.partialorder %v544_v42, 0.0 }
  0xe7   : > { %v1824_v46 = vsel %vm555_vm2, %v515_v41, %v564_v43  ;;  %v1835_v56 = vsel %vm556_vm3, %v544_v42, %v565_v48 }
  0xe8   : > { %v579_v51 = vadd.f32 %v578_v47, %v1824_v46  ;;  %v597_v55 = vmul.f32 %v1824_v46, %v1824_v46  ;;  %v598_v63 = vmul.f32 %v1835_v56, %v1835_v56 }
  0xea   : > { %v580_v59 = vadd.f32 %v579_v51, %v1835_v56  ;;  %v604_v61 = vadd.f32 %v603_v58, %v597_v55 }
  0xec   : > { %v518_v52 = vpop.f32.mrf.mxu0  ;;  %v547_v53 = vpop.f32.mrf.mxu1  ;;  %v605_v6 = vadd.f32 %v604_v61, %v598_v63  ;;  %v637_v63 = vld [vmem:[%s2149_s3] sm:$0x3] }
  0xed   : > { %vm557_vm4 = vcmp.gt.f32.partialorder %v518_v52, 0.0  ;;  %v566_v54 = vmul.f32 %v561_v38, %v518_v52  ;;  %v567_v60 = vmul.f32 %v561_v38, %v547_v53  ;;  %vm558_vm5 = vcmp.gt.f32.partialorder %v547_v53, 0.0 }
  0xef   : > { %v1837_v57 = vsel %vm557_vm4, %v518_v52, %v566_v54  ;;  %v1845_v3 = vsel %vm558_vm5, %v547_v53, %v567_v60  ;;  %v1860_v52 = vld [vmem:[#allocation9] sm:$0x77] }
  0xf0   : > { %v581_v62 = vadd.f32 %v580_v59, %v1837_v57  ;;  %v599_v0 = vmul.f32 %v1837_v57, %v1837_v57  ;;  %v600_v12 = vmul.f32 %v1845_v3, %v1845_v3  ;;  %v635_v54 = vld [vmem:[%s2148_s2] sm:$0x3]  ;;  %v822_v58 = vperm.slane %v1860_v52, 1 }
  0xf1   : > { %v883_v59 = vperm.slane %v1860_v52, 2  ;;  %v823_v61 = vperm.slane %v1860_v52, 5 }
  0xf2   : > { %v582_v7 = vadd.f32 %v581_v62, %v1845_v3  ;;  %v606_v10 = vadd.f32 %v605_v6, %v599_v0  ;;  %v884_v62 = vperm.slane %v1860_v52, 6 }
  0xf4   : > { %v521_v1 = vpop.f32.mrf.mxu0  ;;  %v550_v2 = vpop.f32.mrf.mxu1  ;;  %v607_v15 = vadd.f32 %v606_v10, %v600_v12  ;;  %v808_v10 = vperm.slane %v1860_v52, 0 }
  0xf5   : > { %vm559_vm6 = vcmp.gt.f32.partialorder %v521_v1, 0.0  ;;  %v568_v4 = vmul.f32 %v561_v38, %v521_v1  ;;  %v569_v5 = vmul.f32 %v561_v38, %v550_v2  ;;  %vm560_vm7 = vcmp.gt.f32.partialorder %v550_v2, 0.0 }
  0xf7   : > { %v1848_v8 = vsel %vm559_vm6, %v521_v1, %v568_v4  ;;  %v1851_v11 = vsel %vm560_vm7, %v550_v2, %v569_v5  ;;  %v1872_v4 = vperm.slane %v822_v58, 1  ;;  %v1874_v5 = vperm.slane %v883_v59, 2 }
  0xf8   : > { %v583_v9 = vadd.f32 %v582_v7, %v1848_v8  ;;  %v601_v14 = vmul.f32 %v1848_v8, %v1848_v8  ;;  %v602_v17 = vmul.f32 %v1851_v11, %v1851_v11  ;;  %v1876_v7 = vperm.slane %v823_v61, 1 }
  0xfa   : > { %v584_v13 = vadd.f32 %v583_v9, %v1851_v11  ;;  %v608_v16 = vadd.f32 %v607_v15, %v601_v14  ;;  %v1878_v9 = vperm.slane %v884_v62, 2  ;;  %v809_v14 = vperm.slane %v1860_v52, 4 }
  0xfc   : > { %585 = vadd.xlane.f32.xlu0 %v584_v13  ;;  %v609_v18 = vadd.f32 %v608_v16, %v602_v17  ;;  %v1947_v52 = vperm.slane %v809_v14, 0 }
 0x104   : > { %610 = vadd.xlane.f32.xlu0 %v609_v18 }
 0x16f   : > { %v586_v19 = vpop.xlane.xlu0 %585 }
 0x170   : > { %v587_v20 = vrot.slane %v586_v19, 4 }
 0x172   : > { %v588_v21 = vadd.f32 %v587_v20, %v586_v19 }
 0x174   : > { %v589_v22 = vrot.slane %v588_v21, 2 }
 0x176   : > { %v590_v23 = vadd.f32 %v589_v22, %v588_v21 }
 0x177   : > { %v611_v24 = vpop.xlane.xlu0 %610 }
 0x178   : > { %v612_v25 = vrot.slane %v611_v24, 4  ;;  %v591_v26 = vrot.slane %v590_v23, 1 }
 0x17a   : > { %v613_v27 = vadd.f32 %v612_v25, %v611_v24  ;;  %v592_v28 = vadd.f32 %v591_v26, %v590_v23 }
 0x17c   : > { %v614_v29 = vrot.slane %v613_v27, 2  ;;  %1299 = vpush %v592_v28 }
 0x17e   : > { %v615_v30 = vadd.f32 %v614_v29, %v613_v27 }
 0x180   : > { %v616_v31 = vrot.slane %v615_v30, 1 }
 0x182   : > { %v617_v36 = vadd.f32 %v616_v31, %v615_v30  ;;  %v666_v31 = vld [vmem:[%s2154_s8] sm:$0x3] }
 0x184   : > { %1301 = vpush %v617_v36 }
 0x1ad   : > { %s1300_s25 = spop %1299 }
 0x1ae   : > { %v594_v37 = vstv %s1300_s25 }
 0x1af   : > { %v620_v38 = vmul.f32 0.00012207031, %v594_v37 }
 0x1b1   : > { %v622_v40 = vmul.f32 %v620_v38, %v620_v38 }
 0x1b5   : > { %s1302_s30 = spop %1301 }
 0x1b6   : > { %v619_v39 = vstv %s1302_s30 }
 0x1b7   : > { %v621_v41 = vmul.f32 0.00012207031, %v619_v39 }
 0x1b9   : > { %v623_v42 = vsub.f32 %v621_v41, %v622_v40 }
 0x1bb   : > { %v624_v43 = vadd.f32 1e-08, %v623_v42 }
 0x1bd   : > { %1390 = vrsqrt.f32 %v624_v43  ;;  %vm631_vm9 = vweird.f32 %v624_v43 }
 0x1c3   : > { %v1391_v47 = vpop.eup %1390 }
 0x1c4   : > { %v626_v48 = vmul.f32 %v1391_v47, %v624_v43  ;;  %vm632_vm8 = vweird.f32 %v1391_v47 }
 0x1c5   : > { %vm633_vm10 = vmor %vm631_vm9, %vm632_vm8 }
 0x1c6   : > { %v627_v49 = vmul.f32 %v1391_v47, %v626_v48  ;;  %v1936_v48 = vperm.slane %v808_v10, 0 }
 0x1c8   : > { %v628_v50 = vmul.f32 0.5, %v627_v49 }
 0x1ca   : > { %v629_v51 = vsub.f32 1.5, %v628_v50 }
 0x1cc   : > { %v630_v53 = vmul.f32 %v1391_v47, %v629_v51 }
 0x1ce   : > { %v634_v55 = vsel %vm633_vm10, %v1391_v47, %v630_v53 }
 0x1cf   : > { %v636_v60 = vmul.f32 %v635_v54, %v634_v55 }
 0x1d1   : > { %v638_v0 = vmul.f32 %v636_v60, %v620_v38  ;;  %v641_v1 = vperm.slane %v636_v60, 0  ;;  %v642_v2 = vperm.slane %v636_v60, 1 }
 0x1d3   : > { %v639_v6 = vsub.f32 %v637_v63, %v638_v0  ;;  %v645_v12 = vmul.f32 %v641_v1, %v1820_v44  ;;  %v646_v13 = vmul.f32 %v642_v2, %v1822_v45  ;;  %v649_v17 = vmul.f32 %v641_v1, %v1837_v57 }
 0x1d4   : > { %v651_v18 = vmul.f32 %v641_v1, %v1848_v8  ;;  %v650_v19 = vmul.f32 %v642_v2, %v1845_v3  ;;  %v652_v20 = vmul.f32 %v642_v2, %v1851_v11  ;;  %v647_v21 = vmul.f32 %v641_v1, %v1824_v46 }
 0x1d5   : > { %v654_v15 = vperm.slane %v639_v6, 0  ;;  %v655_v16 = vperm.slane %v639_v6, 1  ;;  %v648_v22 = vmul.f32 %v642_v2, %v1835_v56 }
 0x1d7   : > { %v1890_v44 = vadd.f32 %v654_v15, %v645_v12  ;;  %v1892_v45 = vadd.f32 %v655_v16, %v646_v13  ;;  %v662_v23 = vadd.f32 %v654_v15, %v649_v17  ;;  %v1894_v24 = vadd.f32 %v654_v15, %v651_v18 }
 0x1d8   : > { %v663_v25 = vadd.f32 %v655_v16, %v650_v19  ;;  %v1896_v26 = vadd.f32 %v655_v16, %v652_v20  ;;  %v660_v57 = vadd.f32 %v654_v15, %v647_v21  ;;  %v661_v8 = vadd.f32 %v655_v16, %v648_v22 }
 0x1d9   : > { %v669_v3 = vrot.slane %v1890_v44, 1  ;;  %v670_v11 = vrot.slane %v1892_v45, 1  ;;  %v722_v46 = vrot.slane %v1894_v24, 5  ;;  %v778_v27 = vrot.slane %v662_v23, 6 }
 0x1da   : > { %v782_v56 = vrot.slane %v1894_v24, 6  ;;  %v723_v28 = vrot.slane %v1896_v26, 5  ;;  %v780_v29 = vrot.slane %v663_v25, 6  ;;  %v784_v30 = vrot.slane %v1896_v26, 6 }
 0x1db   : > { %1284 = vmatpush.msk.msrb.mxu0 %vm675_vm11, %v669_v3  ;;  %1286 = vmatpush.msk.msrb.mxu1 %vm675_vm11, %v670_v11  ;;  %v772_v36 = vrot.slane %v1890_v44, 6  ;;  %v774_v37 = vrot.slane %v660_v57, 6  ;;  %v773_v38 = vrot.slane %v1892_v45, 6  ;;  %v776_v39 = vrot.slane %v661_v8, 6 }
 0x1dc   : > { %1288 = vmatpush.msk.msra.mxu2 %vm675_vm11, %v722_v46  ;;  %v1915_v40 = vsel %vm675_vm11, %v778_v27, %v782_v56  ;;  %1290 = vmatpush.msk.msra.mxu3 %vm675_vm11, %v723_v28  ;;  %v1921_v41 = vsel %vm675_vm11, %v780_v29, %v784_v30 }
 0x1dd   : > { %v1925_v42 = vmul.f32 %v1872_v4, %v1915_v40  ;;  %v1929_v43 = vmul.f32 %v1874_v5, %v1915_v40  ;;  %v1933_v47 = vmul.f32 %v1876_v7, %v1921_v41  ;;  %1285 = vmatmul.msk.f32.vlgmr.msrb.gmra.mxu0 %vm671_vm12, %v666_v31  ;;  %1287 = vmatmul.msk.f32.vlgmr.msrb.gmra.mxu1 %vm671_vm12, %v666_v31 }
 0x1de   : > { %1289 = vmatmul.msk.f32.vlgmr.msra.gmra.mxu2 %vm671_vm12, %v666_v31  ;;  %v775_v49 = vsel %vm675_vm11, %v772_v36, %v774_v37  ;;  %v779_v50 = vsel %vm675_vm11, %v774_v37, %v778_v27  ;;  %v777_v51 = vsel %vm675_vm11, %v773_v38, %v776_v39  ;;  %v1953_v55 = vmul.f32 %v1878_v9, %v1921_v41 }
 0x1df   : > { %v859_v53 = vrot.slane %v1925_v42, 2  ;;  %v920_v54 = vrot.slane %v1929_v43, 4  ;;  %1291 = vmatmul.msk.f32.vlgmr.msra.gmra.mxu3 %vm671_vm12, %v666_v31  ;;  %v830_v58 = vmul.f32 %v1872_v4, %v775_v49  ;;  %v832_v59 = vmul.f32 %v1872_v4, %v779_v50 }
 0x1e0   : > { %v891_v60 = vmul.f32 %v1874_v5, %v775_v49  ;;  %v781_v61 = vsel %vm675_vm11, %v776_v39, %v780_v29  ;;  %v861_v62 = vrot.slane %v1933_v47, 2  ;;  %v831_v63 = vmul.f32 %v1876_v7, %v777_v51 }
 0x1e1   : > { %v833_v0 = vmul.f32 %v1876_v7, %v781_v61  ;;  %v892_v1 = vmul.f32 %v1878_v9, %v777_v51  ;;  %v816_v2 = vmul.f32 %v1936_v48, %v775_v49  ;;  %v850_v6 = vrot.slane %v830_v58, 2 }
 0x1e2   : > { %v855_v10 = vrot.slane %v832_v59, 2  ;;  %v817_v12 = vmul.f32 %v1947_v52, %v777_v51  ;;  %v911_v13 = vrot.slane %v891_v60, 4  ;;  %v853_v14 = vrot.slane %v831_v63, 2 }
 0x1e3   : > { %v857_v15 = vrot.slane %v833_v0, 2  ;;  %v818_v16 = vmul.f32 %v1936_v48, %v779_v50  ;;  %v914_v18 = vrot.slane %v892_v1, 4  ;;  %v819_v19 = vmul.f32 %v1947_v52, %v781_v61 }
 0x1e4   : > { %v856_v17 = vsel %vm848_vm13, %v850_v6, %v855_v10  ;;  %v860_v20 = vsel %vm848_vm13, %v855_v10, %v859_v53  ;;  %v893_v3 = vmul.f32 %v1874_v5, %v779_v50  ;;  %v894_v11 = vmul.f32 %v1878_v9, %v781_v61 }
 0x1e5   : > { %v877_v21 = vadd.f32 %v856_v17, %v816_v2  ;;  %v858_v22 = vsel %vm848_vm13, %v853_v14, %v857_v15  ;;  %v862_v23 = vsel %vm848_vm13, %v857_v15, %v861_v62  ;;  %v879_v25 = vadd.f32 %v860_v20, %v818_v16 }
 0x1e6   : > { %v878_v57 = vadd.f32 %v858_v22, %v817_v12  ;;  %v880_v8 = vadd.f32 %v862_v23, %v819_v19  ;;  %v922_v46 = vrot.slane %v1953_v55, 4  ;;  %v916_v27 = vrot.slane %v893_v3, 4 }
 0x1e7   : > { %v918_v28 = vrot.slane %v894_v11, 4  ;;  %v2004_v20 = vstv %s462_s14  ;;  %s1152_s14 = scalar_lea.sflag [#allocation6], %s1780_s27 }
 0x1e8   : > { %v917_v29 = vsel %vm909_vm14, %v911_v13, %v916_v27  ;;  %v921_v37 = vsel %vm909_vm14, %v916_v27, %v920_v54 }
 0x1e9   : > { %v919_v31 = vsel %vm909_vm14, %v914_v18, %v918_v28  ;;  %v923_v39 = vsel %vm909_vm14, %v918_v28, %v922_v46  ;;  %v938_v49 = vadd.f32 %v917_v29, %v877_v21  ;;  %v1987_v51 = vadd.f32 %v921_v37, %v879_v25 }
 0x1ea   : > { %v939_v50 = vadd.f32 %v919_v31, %v878_v57  ;;  %v1989_v58 = vadd.f32 %v923_v39, %v880_v8  ;;  %v820_v25 = vmul.f32 %v1936_v48, %v1915_v40 }
 0x1eb   : > { %vm946_vm15 = vcmp.gt.f32.partialorder %v938_v49, 0.0  ;;  %vm948_vm1 = vcmp.gt.f32.partialorder %v1987_v51, 0.0 }
 0x1ec   : > { %vm947_vm0 = vcmp.gt.f32.partialorder %v939_v50, 0.0  ;;  %v956_v40 = vmul.f32 %v2004_v20, %v939_v50  ;;  %vm949_vm4 = vcmp.gt.f32.partialorder %v1989_v58, 0.0 }
 0x25a   : > { %v697_v59 = vpop.f32.mrf.mxu0  ;;  %v717_v61 = vpop.f32.mrf.mxu1 }
 0x25b   : > { %v802_v60 = vsel %vm675_vm11, %v697_v59, %v772_v36  ;;  %v803_v1 = vsel %vm675_vm11, %v717_v61, %v773_v38 }
 0x25c   : > { %v828_v63 = vmul.f32 %v1872_v4, %v802_v60  ;;  %v889_v0 = vmul.f32 %v1874_v5, %v802_v60  ;;  %v829_v2 = vmul.f32 %v1876_v7, %v803_v1  ;;  %v890_v10 = vmul.f32 %v1878_v9, %v803_v1 }
 0x25d   : > { %v814_v16 = vmul.f32 %v1936_v48, %v802_v60  ;;  %v815_v45 = vmul.f32 %v1947_v52, %v803_v1  ;;  %v2048_v1 = vsel %vm947_vm0, %v939_v50, %v956_v40 }
 0x25e   : > { %v849_v12 = vrot.slane %v828_v63, 2  ;;  %v910_v15 = vrot.slane %v889_v0, 4  ;;  %v852_v44 = vrot.slane %v829_v2, 2  ;;  %v913_v17 = vrot.slane %v890_v10, 4 }
 0x25f   : > { %v958_v10 = vmul.f32 %v2004_v20, %v1989_v58 }
 0x260   : > { %v851_v36 = vsel %vm848_vm13, %v849_v12, %v850_v6  ;;  %v912_v19 = vsel %vm909_vm14, %v910_v15, %v911_v13  ;;  %v854_v38 = vsel %vm848_vm13, %v852_v44, %v853_v14  ;;  %v915_v22 = vsel %vm909_vm14, %v913_v17, %v914_v18 }
 0x261   : > { %v875_v21 = vadd.f32 %v851_v36, %v814_v16  ;;  %v745_v23 = vpop.f32.mrf.mxu2  ;;  %v876_v57 = vadd.f32 %v854_v38, %v815_v45  ;;  %v821_v6 = vmul.f32 %v1947_v52, %v1921_v41  ;;  %v955_v18 = vmul.f32 %v2004_v20, %v938_v49 }
 0x262   : > { %v798_v8 = vrot.slane %v745_v23, 6  ;;  %v765_v3 = vpop.f32.mrf.mxu3  ;;  %v2078_v36 = vsel %vm949_vm4, %v1989_v58, %v958_v10  ;;  %v1080_v10 = vld [vmem:[#allocation10 + $0xb8] sm:$0xff] }
 0x263   : > { %v936_v13 = vadd.f32 %v912_v19, %v875_v21  ;;  %v799_v11 = vrot.slane %v765_v3, 6  ;;  %v937_v27 = vadd.f32 %v915_v22, %v876_v57  ;;  %v2037_v26 = vsel %vm946_vm15, %v938_v49, %v955_v18 }
 0x264   : > { %v804_v14 = vsel %vm675_vm11, %v782_v56, %v798_v8  ;;  %v957_v56 = vmul.f32 %v2004_v20, %v1987_v51  ;;  %v988_v42 = vmul.f32 %v2037_v26, %v2037_v26  ;;  %v991_v22 = vmul.f32 %v2078_v36, %v2078_v36 }
 0x265   : > { %vm944_vm2 = vcmp.gt.f32.partialorder %v936_v13, 0.0  ;;  %v953_v48 = vmul.f32 %v2004_v20, %v936_v13  ;;  %v836_v41 = vmul.f32 %v1872_v4, %v804_v14  ;;  %v897_v52 = vmul.f32 %v1874_v5, %v804_v14 }
 0x266   : > { %vm945_vm3 = vcmp.gt.f32.partialorder %v937_v27, 0.0  ;;  %v954_v28 = vmul.f32 %v2004_v20, %v937_v27  ;;  %v805_v24 = vsel %vm675_vm11, %v784_v30, %v799_v11  ;;  %v2066_v47 = vsel %vm948_vm1, %v1987_v51, %v957_v56 }
 0x267   : > { %v2028_v29 = vsel %vm944_vm2, %v936_v13, %v953_v48  ;;  %v863_v31 = vrot.slane %v836_v41, 2  ;;  %v924_v37 = vrot.slane %v897_v52, 4  ;;  %v837_v39 = vmul.f32 %v1876_v7, %v805_v24 }
 0x268   : > { %v986_v4 = vmul.f32 %v2028_v29, %v2028_v29  ;;  %v2033_v5 = vsel %vm945_vm3, %v937_v27, %v954_v28  ;;  %v898_v59 = vmul.f32 %v1878_v9, %v805_v24  ;;  %v990_v17 = vmul.f32 %v2066_v47, %v2066_v47 }
 0x269   : > { %v987_v30 = vmul.f32 %v2033_v5, %v2033_v5  ;;  %v864_v60 = vsel %vm848_vm13, %v859_v53, %v863_v31  ;;  %v865_v61 = vrot.slane %v837_v39, 2  ;;  %v925_v7 = vsel %vm909_vm14, %v920_v54, %v924_v37  ;;  %v1072_v37 = vld [vmem:[#allocation10 + $0x78] sm:$0xff] }
 0x26a   : > { %v926_v63 = vrot.slane %v898_v59, 4  ;;  %v881_v0 = vadd.f32 %v864_v60, %v820_v25  ;;  %v969_v9 = vadd.f32 %v2033_v5, %v2028_v29  ;;  %v1088_v39 = vld [vmem:[#allocation10 + $0xf8] sm:$0xff]  ;;  %1089 = vmatpush.msrb.mxu2 %v1072_v37  ;;  %v1087_v59 = vld [vmem:[#allocation10 + $0xf0] sm:$0xff]  ;;  %v1086_v60 = vld [vmem:[#allocation10 + $0xe8] sm:$0xff] }
 0x26b   : > { %v866_v49 = vsel %vm848_vm13, %v861_v62, %v865_v61  ;;  %v994_v53 = vadd.f32 %v987_v30, %v986_v4  ;;  %v989_v62 = vmul.f32 %v2048_v1, %v2048_v1  ;;  %1118 = vmatpush.msrb.mxu3 %v1088_v39  ;;  %v1071_v4 = vld [vmem:[#allocation10 + $0x70] sm:$0xff]  ;;  %v1070_v30 = vld [vmem:[#allocation10 + $0x68] sm:$0xff]  ;;  %v1069_v61 = vld [vmem:[#allocation10 + $0x60] sm:$0xff] }
 0x26c   : > { %v882_v2 = vadd.f32 %v866_v49, %v821_v6  ;;  %v927_v43 = vsel %vm909_vm14, %v922_v46, %v926_v63  ;;  %v942_v54 = vadd.f32 %v925_v7, %v881_v0  ;;  %v970_v50 = vadd.f32 %v969_v9, %v2037_v26  ;;  %1090 = vmatpush.msrb.mxu2 %v1071_v4  ;;  %v1085_v7 = vld [vmem:[#allocation10 + $0xe0] sm:$0xff]  ;;  %v1068_v63 = vld [vmem:[#allocation10 + $0x58] sm:$0xff]  ;;  %v1067_v9 = vld [vmem:[#allocation10 + $0x50] sm:$0xff] }
 0x26d   : > { %v995_v12 = vadd.f32 %v994_v53, %v988_v42  ;;  %1119 = vmatpush.msrb.mxu3 %v1087_v59  ;;  %v1084_v0 = vld [vmem:[#allocation10 + $0xd8] sm:$0xff]  ;;  %v1083_v49 = vld [vmem:[#allocation10 + $0xd0] sm:$0xff]  ;;  %v1066_v42 = vld [vmem:[#allocation10 + $0x48] sm:$0xff] }
 0x26e   : > { %v943_v15 = vadd.f32 %v927_v43, %v882_v2  ;;  %v971_v55 = vadd.f32 %v970_v50, %v2048_v1  ;;  %v959_v46 = vmul.f32 %v2004_v20, %v942_v54  ;;  %vm950_vm5 = vcmp.gt.f32.partialorder %v942_v54, 0.0  ;;  %1091 = vmatpush.msrb.mxu2 %v1070_v30  ;;  %v1082_v53 = vld [vmem:[#allocation10 + $0xc8] sm:$0xff]  ;;  %v1065_v2 = vld [vmem:[#allocation10 + $0x40] sm:$0xff]  ;;  %v1064_v50 = vld [vmem:[#allocation10 + $0x38] sm:$0xff] }
 0x26f   : > { %v996_v16 = vadd.f32 %v995_v12, %v989_v62  ;;  %1120 = vmatpush.msrb.mxu3 %v1086_v60  ;;  %v1081_v43 = vld [vmem:[#allocation10 + $0xc0] sm:$0xff]  ;;  %v1063_v62 = vld [vmem:[#allocation10 + $0x30] sm:$0xff] }
 0x270   : > { %v972_v44 = vadd.f32 %v971_v55, %v2066_v47  ;;  %v960_v51 = vmul.f32 %v2004_v20, %v943_v15  ;;  %vm951_vm6 = vcmp.gt.f32.partialorder %v943_v15, 0.0  ;;  %v2081_v21 = vsel %vm950_vm5, %v942_v54, %v959_v46  ;;  %1092 = vmatpush.msrb.mxu2 %v1069_v61  ;;  %v1079_v12 = vld [vmem:[#allocation10 + $0xb0] sm:$0xff]  ;;  %v1078_v55 = vld [vmem:[#allocation10 + $0xa8] sm:$0xff] }
 0x271   : > { %v997_v45 = vadd.f32 %v996_v16, %v990_v17  ;;  %v992_v58 = vmul.f32 %v2081_v21, %v2081_v21  ;;  %1121 = vmatpush.msrb.mxu3 %v1085_v7  ;;  %v1061_v16 = vld [vmem:[#allocation10 + $0x20] sm:$0xff] }
 0x272   : > { %v973_v19 = vadd.f32 %v972_v44, %v2078_v36  ;;  %v2086_v23 = vsel %vm951_vm6, %v943_v15, %v960_v51  ;;  %1093 = vmatpush.msrb.mxu2 %v1068_v63  ;;  %v1062_v15 = vld [vmem:[#allocation10 + $0x28] sm:$0xff]  ;;  %v1077_v44 = vld [vmem:[#allocation10 + $0xa0] sm:$0xff]  ;;  %v1060_v51 = vld [vmem:[#allocation10 + $0x18] sm:$0xff] }
 0x273   : > { %v998_v57 = vadd.f32 %v997_v45, %v991_v22  ;;  %v993_v8 = vmul.f32 %v2086_v23, %v2086_v23  ;;  %1122 = vmatpush.msrb.mxu3 %v1084_v0  ;;  %v1059_v22 = vld [vmem:[#allocation10 + $0x10] sm:$0xff] }
 0x274   : > { %v974_v38 = vadd.f32 %v973_v19, %v2081_v21  ;;  %1094 = vmatpush.msrb.mxu2 %v1067_v9  ;;  %v1076_v19 = vld [vmem:[#allocation10 + $0x98] sm:$0xff] }
 0x275   : > { %v999_v20 = vadd.f32 %v998_v57, %v992_v58  ;;  %1123 = vmatpush.msrb.mxu3 %v1083_v49  ;;  %v1058_v58 = vld [vmem:[#allocation10 + $0x8] sm:$0xff] }
 0x276   : > { %v975_v25 = vadd.f32 %v974_v38, %v2086_v23  ;;  %1095 = vmatpush.msrb.mxu2 %v1066_v42 }
 0x277   : > { %v1000_v3 = vadd.f32 %v999_v20, %v993_v8  ;;  %1124 = vmatpush.msrb.mxu3 %v1082_v53  ;;  %v1074_v20 = vld [vmem:[#allocation10 + $0x88] sm:$0xff] }
 0x278   : > { %976 = vadd.xlane.f32.xlu1 %v975_v25  ;;  %1096 = vmatpush.msrb.mxu2 %v1065_v2  ;;  %v1075_v25 = vld [vmem:[#allocation10 + $0x90] sm:$0xff] }
 0x279   : > { %1125 = vmatpush.msrb.mxu3 %v1081_v43 }
 0x27a   : > { %1097 = vmatpush.msrb.mxu2 %v1064_v50 }
 0x27b   : > { %1126 = vmatpush.msrb.mxu3 %v1080_v10 }
 0x27c   : > { %1098 = vmatpush.msrb.mxu2 %v1063_v62 }
 0x27d   : > { %1127 = vmatpush.msrb.mxu3 %v1079_v12 }
 0x27e   : > { %1099 = vmatpush.msrb.mxu2 %v1062_v15 }
 0x27f   : > { %1128 = vmatpush.msrb.mxu3 %v1078_v55 }
 0x280   : > { %1001 = vadd.xlane.f32.xlu1 %v1000_v3  ;;  %1100 = vmatpush.msrb.mxu2 %v1061_v16  ;;  %v1057_v3 = vld [vmem:[#allocation10] sm:$0xff] }
 0x281   : > { %1129 = vmatpush.msrb.mxu3 %v1077_v44 }
 0x282   : > { %1101 = vmatpush.msrb.mxu2 %v1060_v51 }
 0x283   : > { %1130 = vmatpush.msrb.mxu3 %v1076_v19 }
 0x284   : > { %1102 = vmatpush.msrb.mxu2 %v1059_v22 }
 0x285   : > { %1131 = vmatpush.msrb.mxu3 %v1075_v25 }
 0x286   : > { %1103 = vmatpush.msrb.mxu2 %v1058_v58 }
 0x287   : > { %1132 = vmatpush.msrb.mxu3 %v1074_v20 }
 0x288   : > { %1104 = vmatpush.msrb.mxu2 %v1057_v3 }
 0x2eb   : > { %v977_v6 = vpop.xlane.xlu1 %976 }
 0x2ec   : > { %v978_v13 = vrot.slane %v977_v6, 4 }
 0x2ee   : > { %v979_v11 = vadd.f32 %v978_v13, %v977_v6  ;;  %v1073_v6 = vld [vmem:[#allocation10 + $0x80] sm:$0xff] }
 0x2ef   : > { %1133 = vmatpush.msrb.mxu3 %v1073_v6 }
 0x2f0   : > { %v980_v27 = vrot.slane %v979_v11, 2 }
 0x2f2   : > { %v981_v14 = vadd.f32 %v980_v27, %v979_v11 }
 0x2f3   : > { %v1002_v18 = vpop.xlane.xlu1 %1001 }
 0x2f4   : > { %v1003_v40 = vrot.slane %v1002_v18, 4  ;;  %v982_v48 = vrot.slane %v981_v14, 1 }
 0x2f6   : > { %v1004_v41 = vadd.f32 %v1003_v40, %v1002_v18  ;;  %v983_v52 = vadd.f32 %v982_v48, %v981_v14  ;;  %v1026_v48 = vld [vmem:[%s2151_s5] sm:$0x3] }
 0x2f8   : > { %v1005_v28 = vrot.slane %v1004_v41, 2  ;;  %1303 = vpush %v983_v52 }
 0x2fa   : > { %v1006_v24 = vadd.f32 %v1005_v28, %v1004_v41  ;;  %v1028_v28 = vld [vmem:[%s2152_s6] sm:$0x3] }
 0x2fc   : > { %v1007_v56 = vrot.slane %v1006_v24, 1 }
 0x2fe   : > { %v1008_v31 = vadd.f32 %v1007_v56, %v1006_v24 }
 0x300   : > { %1305 = vpush %v1008_v31 }
 0x329   : > { %s1304_s19 = spop %1303 }
 0x32a   : > { %v985_v54 = vstv %s1304_s19  ;;  %s1528_s19 = sshra.s32 %s1167_s29, 4  ;;  %s1529_s19 = int_to_ptr.hbm [resolvable:$true] %s1528_s19 }
 0x32b   : > { %v1011_v46 = vmul.f32 0.00012207031, %v985_v54  ;;  %s1530_s9 = scalar_lea.hbm %s1529_s19, 32  ;;  %p1535_p11 = scmp.lt.s32.totalorder %s1529_s19, %s2157_s11 }
 0x32c   : > { %p1531_p1 = scmp.ne.s32.totalorder %s1529_s19, %s1530_s9  ;;  %p1536_p9 = scmp.lt.s32.totalorder %s1534_s1, %s1530_s9 }
 0x32d   : > { %v1013_v45 = vmul.f32 %v1011_v46, %v1011_v46 }
 0x32e   : > { %p1532_p4 = pnand %p1531_p1, %p1750_p3  ;;  %p1537_p2 = por %p1536_p9, %p1535_p11 }
 0x330   : > { %p1533_p8 = pneg %p1532_p4 }
 0x331   : > { %s1306_s7 = spop %1305 }
 0x332   : > { %v1010_v17 = vstv %s1306_s7  ;;  %p1538_p10 = pnand %p1537_p2, %p1533_p8 }
 0x333   : > { %v1012_v38 = vmul.f32 0.00012207031, %v1010_v17 }
 0x335   : > { %v1014_v57 = vsub.f32 %v1012_v38, %v1013_v45 }
 0x337   : > { %v1015_v8 = vadd.f32 1e-08, %v1014_v57 }
 0x339   : > { %1392 = vrsqrt.f32 %v1015_v8  ;;  %vm1022_vm8 = vweird.f32 %v1015_v8 }
 0x33f   : > { %v1393_v13 = vpop.eup %1392 }
 0x340   : > { %v1017_v11 = vmul.f32 %v1393_v13, %v1015_v8  ;;  %vm1023_vm7 = vweird.f32 %v1393_v13 }
 0x341   : > { %vm1024_vm9 = vmor %vm1022_vm8, %vm1023_vm7 }
 0x342   : > { %v1018_v27 = vmul.f32 %v1393_v13, %v1017_v11 }
 0x344   : > { %v1019_v14 = vmul.f32 0.5, %v1018_v27 }
 0x346   : > { %v1020_v18 = vsub.f32 1.5, %v1019_v14 }
 0x348   : > { %v1021_v40 = vmul.f32 %v1393_v13, %v1020_v18 }
 0x34a   : > { %v1025_v41 = vsel %vm1024_vm9, %v1393_v13, %v1021_v40 }
 0x34b   : > { %v1027_v52 = vmul.f32 %v1026_v48, %v1025_v41 }
 0x34d   : > { %v1029_v24 = vmul.f32 %v1027_v52, %v1011_v46  ;;  %v1032_v56 = vperm.slane %v1027_v52, 0  ;;  %v1033_v31 = vperm.slane %v1027_v52, 1 }
 0x34f   : > { %v1030_v37 = vsub.f32 %v1028_v28, %v1029_v24  ;;  %v1036_v39 = vmul.f32 %v1032_v56, %v2028_v29  ;;  %v1037_v59 = vmul.f32 %v1033_v31, %v2033_v5  ;;  %v1038_v7 = vmul.f32 %v1032_v56, %v2037_v26 }
 0x350   : > { %v1039_v63 = vmul.f32 %v1033_v31, %v2048_v1  ;;  %v1040_v49 = vmul.f32 %v1032_v56, %v2066_v47  ;;  %v1041_v29 = vmul.f32 %v1033_v31, %v2078_v36  ;;  %v1042_v53 = vmul.f32 %v1032_v56, %v2081_v21 }
 0x351   : > { %v1045_v4 = vperm.slane %v1030_v37, 0  ;;  %v1046_v30 = vperm.slane %v1030_v37, 1  ;;  %v1043_v2 = vmul.f32 %v1033_v31, %v2086_v23 }
 0x353   : > { %v1049_v60 = vadd.f32 %v1045_v4, %v1036_v39  ;;  %v1050_v61 = vadd.f32 %v1046_v30, %v1037_v59  ;;  %v1051_v0 = vadd.f32 %v1045_v4, %v1038_v7  ;;  %v1052_v9 = vadd.f32 %v1046_v30, %v1039_v63 }
 0x354   : > { %v1053_v42 = vadd.f32 %v1045_v4, %v1040_v49  ;;  %v1054_v5 = vadd.f32 %v1046_v30, %v1041_v29  ;;  %v1055_v26 = vadd.f32 %v1045_v4, %v1042_v53  ;;  %v1056_v43 = vadd.f32 %v1046_v30, %v1043_v2 }
 0x355   : > { %1105 = vmatmul.f32.vlgmr.msrb.gmra.mxu2 %v1049_v60  ;;  %1134 = vmatmul.f32.vlgmr.msrb.gmra.mxu3 %v1050_v61 }
 0x35d   : > { %1108 = vmatmul.f32.gmra.mxu2 %v1051_v0  ;;  %1137 = vmatmul.f32.gmra.mxu3 %v1052_v9 }
 0x365   : > { %1111 = vmatmul.f32.gmra.mxu2 %v1053_v42  ;;  %1140 = vmatmul.f32.gmra.mxu3 %v1054_v5 }
 0x36d   : > { %1114 = vmatmul.f32.gmra.mxu2 %v1055_v26  ;;  %1143 = vmatmul.f32.gmra.mxu3 %v1056_v43 }
 0x3d8   : > { %v1106_v1 = vpop.f32.mrf.mxu2  ;;  %v1135_v54 = vpop.f32.mrf.mxu3 }
 0x3d9   : > { %v1107_v47 = vadd.f32 %v1106_v1, %v1801_v32 }
 0x3db   : > { %v1136_v50 = vadd.f32 %v1135_v54, %v1107_v47 }
 0x3dd   : > { %1147 = vst [vmem:[%s456_s13] sm:$0xff] %v1136_v50 }
 0x3e0   : > { %v1109_v36 = vpop.f32.mrf.mxu2  ;;  %v1138_v10 = vpop.f32.mrf.mxu3 }
 0x3e1   : > { %v1110_v62 = vadd.f32 %v1109_v36, %v1806_v33 }
 0x3e3   : > { %v1139_v21 = vadd.f32 %v1138_v10, %v1110_v62 }
 0x3e5   : > { %1148 = vst [vmem:[%s456_s13 + $0x8] sm:$0xff] %v1139_v21 }
 0x3e8   : > { %v1112_v23 = vpop.f32.mrf.mxu2  ;;  %v1141_v12 = vpop.f32.mrf.mxu3 }
 0x3e9   : > { %v1113_v15 = vadd.f32 %v1112_v23, %v1811_v34 }
 0x3eb   : > { %v1142_v55 = vadd.f32 %v1141_v12, %v1113_v15 }
 0x3ed   : > { %1149 = vst [vmem:[%s456_s13 + $0x10] sm:$0xff] %v1142_v55 }
 0x3f0   : > { %v1115_v32 = vpop.f32.mrf.mxu2  ;;  %v1144_v46 = vpop.f32.mrf.mxu3 }
 0x3f1   : > { %v1116_v33 = vadd.f32 %v1115_v32, %v1816_v35 }
 0x3f3   : > { %v1145_v16 = vadd.f32 %v1144_v46, %v1116_v33 }
 0x3f5   : > { %1150 = vst [vmem:[%s456_s13 + $0x18] sm:$0xff] %v1145_v16 }
 0x3f6   : > { %1541 = shalt.err (!%p1538_p10)
}
 0x3f7   : > { %s1597_s27 = smov 128   ;;  %s1598_s13 = smov 8  }
 0x3f8   : > { %1321 = dma.vmem_to_hbm [thread:$0]  (%p1750_p3), %s1165_s15, 512, %s1167_s29, %s1152_s14, %s1597_s27, %s1597_s27, %s1598_s13  }
 0x3f9 PF: > { %s1181_s16 = sand.u32 1, %s1576_s21   ;;  %p2174_p12 = scmp.ge.s32.totalorder %s1588_s24, 2 }
 0x3fa   : > { %s1182_s20 = scalar_lea.sflag [#allocation6], %s1181_s16 }
 0x3fb   : > { %p1338_p13 = pnand %p2174_p12, %p1700_p6 }
 0x3fd   : > { %p1339_p0 = pneg %p1338_p13 }
 0x3ff   : > { %1571 = dma.done.wait (%p1339_p0), %s1182_s20, 512  }
 0x400   : > { %1573 = vsyncadd (%p1339_p0), %s1182_s20, 4294966784  ;;  %p28_p5 = scmp.ge.s32.totalorder %s1737_s18, 4   ;;  %s2175_s21 = smov %s1580_s22 }
 0x401   : > { %s2176_s22 = smov %s1584_s23  ;;  %s2177_s23 = smov %s1746_s17 }
 0x402   : > { %s2178_s24 = smov %s1737_s18  ;;  %30 = sbr.rel (!%p28_p5) target bundleno = 13 (0xd), region = 121 }
 0x407   :  { %1188 = vsyncpa [#allocation5], 1 }
 0x408   :  { %1190 = vsyncpa [#allocation5 + $0x1], 1 }
 0x409   :  { %1191 = vsyncpa [#allocation8], 1 }
 0x40a   :  { %1192 = vsyncpa [#allocation11], 1 }
 0x40b   :  { %1193 = vsyncpa [#allocation6], 1 }
 0x40c   :  { %1195 = vsyncpa [#allocation6 + $0x1], 1 }

</bundles_post_ra>
